<compile_context>
chip_gen: v7x
topology: tpu7x:2x2x1
jax: 0.10.0
libtpu: 0.0.40
codegen_flags: <defaults>
</compile_context>

<pallas_src>
import functools

import jax
import jax.numpy as jnp
from jax import lax
from jax.experimental import pallas as pl
from jax.experimental.pallas import tpu as pltpu

_NEG_BIG = -1e30                   # diagonal mask value (replaces eye*1e18)
_VMEM_LIMIT = 48 * 1024 * 1024     # < 64 MiB physical on v7x, ample on v5e/v6e


def _tile_targets():
    """(row_tile, key_tile) targets per generation: v5e/v6e have 128 MiB VMEM,
    v7x only 64 MiB, so tile roughly 2x smaller there."""
    try:
        vmem = pltpu.get_tpu_info().vmem_capacity_bytes
    except Exception:
        vmem = 64 * 1024 * 1024
    if vmem >= 96 * 1024 * 1024:
        return 512, 1024           # v5e / v6e
    return 256, 512                # v7x (or conservative default)


def _pick_tile(B, target):
    """Largest tile <= target that divides B and satisfies the (8,128) rule."""
    if B <= target:
        return B                   # single block == full dim (always legal)
    for cand in range(target, 0, -128):    # lane/sublane-aligned candidates
        if B % cand == 0:
            return cand
    return B                       # no aligned divisor: one block on this axis


def _softnn_scores_kernel(enc_q_ref, enc_k_ref, sq_ref, scores_ref, loss_ref,
                          m_sc, den_sc, num_sc, *, inv_tau, tm, tn):
    i = pl.program_id(0)           # query-row tile
    j = pl.program_id(1)           # key-column tile (reduction axis, innermost)

    @pl.when(j == 0)
    def _init():
        m_sc[...] = jnp.full_like(m_sc, -jnp.inf)
        den_sc[...] = jnp.zeros_like(den_sc)
        num_sc[...] = jnp.zeros_like(num_sc)

    # Gram tile on the MXU; contract the hidden dim of both operands directly.
    gram = lax.dot_general(
        enc_q_ref[...], enc_k_ref[...],
        dimension_numbers=(((1,), (1,)), ((), ())),
        preferred_element_type=jnp.float32)                      # (tm, tn)

    # logits = -(|x_i|^2 + |x_j|^2 - 2 x_i.x_j)/tau ; the row-constant |x_i|^2
    # cancels between numerator and denominator, so it is dropped.
    logits = (2.0 * gram - sq_ref[...].astype(jnp.float32)) * inv_tau

    # Mask the global diagonal (eye_mask.logical_not()) with a single where().
    grow = i * tm + lax.broadcasted_iota(jnp.int32, (tm, tn), 0)
    gcol = j * tn + lax.broadcasted_iota(jnp.int32, (tm, tn), 1)
    logits = jnp.where(grow == gcol, _NEG_BIG, logits)

    # Online logsumexp sharing ONE exp pass between numerator and denominator:
    #   denom_lse = m + log(sum exp(l - m))
    #   numer_lse = m + log(sum (scores + 1e-18) * exp(l - m))
    # identical to torch's logsumexp(l + log(scores + 1e-18)); the weighted sum
    # is >= 1e-18 so it cannot underflow in f32.
    m_prev = m_sc[...]
    m_new = jnp.maximum(m_prev, jnp.max(logits, axis=-1, keepdims=True))
    alpha = jnp.exp(m_prev - m_new)
    p = jnp.exp(logits - m_new)                                   # (tm, tn)

    scores = scores_ref[...].astype(jnp.float32)
    den_sc[...] = alpha * den_sc[...] + jnp.sum(p, axis=-1, keepdims=True)
    num_sc[...] = alpha * num_sc[...] + jnp.sum(p * (scores + 1e-18),
                                                axis=-1, keepdims=True)
    m_sc[...] = m_new

    @pl.when(j == pl.num_programs(1) - 1)
    def _finalize():
        # loss = -(numer_lse - denom_lse); the shared max cancels exactly.
        loss = jnp.log(den_sc[...]) - jnp.log(num_sc[...])        # (tm, 1)
        loss_ref[...] = loss.astype(loss_ref.dtype)
        # TODO(synk): the torch scores-path prints a WIP warning and calls
        # exit(); the dead torch.where(scores.sum(-1) > 1e-5, ...) after it is
        # intentionally not reproduced.


def contrastive_loss_softnn(encodings, scores, tau=1.0):
    """ContrastiveLoss(metric='euclidean', loss_type='softnn', tau).forward(
    encodings, scores=scores) -> (B, 1) loss (torch keepdim=True)."""
    B = encodings.shape[0]
    enc = encodings.reshape(B, -1)
    D = enc.shape[-1]
    assert scores.shape == (B, B)

    # Column norms |x_j|^2, computed once (the row term cancels in the loss).
    sq = jnp.sum(jnp.square(enc.astype(jnp.float32)), axis=-1).reshape(1, B)

    row_target, key_target = _tile_targets()
    tm = _pick_tile(B, row_target)
    tn = _pick_tile(B, key_target)
    grid = (B // tm, B // tn)          # reduction (key) axis last

    kernel = functools.partial(_softnn_scores_kernel,
                               inv_tau=float(1.0 / tau), tm=tm, tn=tn)

    enc_bytes = jnp.dtype(enc.dtype).itemsize
    cost = pl.CostEstimate(
        flops=2 * B * B * D,                       # Gram matmul
        transcendentals=B * B,                     # one shared exp per element
        bytes_accessed=(2 * B * D * enc_bytes      # encodings as LHS + RHS
                        + B * B * jnp.dtype(scores.dtype).itemsize
                        + B * 4 + B * 4))          # sq in, loss out

    return pl.pallas_call(
        kernel,
        out_shape=jax.ShapeDtypeStruct((B, 1), jnp.float32),
        grid_spec=pltpu.PrefetchScalarGridSpec(
            num_scalar_prefetch=0,
            grid=grid,
            in_specs=[
                pl.BlockSpec((tm, D), lambda i, j: (i, 0)),    # query rows
                pl.BlockSpec((tn, D), lambda i, j: (j, 0)),    # key rows
                pl.BlockSpec((1, tn), lambda i, j: (0, j)),    # |x_j|^2
                pl.BlockSpec((tm, tn), lambda i, j: (i, j)),   # scores tile
            ],
            out_specs=pl.BlockSpec((tm, 1), lambda i, j: (i, 0)),
            scratch_shapes=[
                pltpu.VMEM((tm, 1), jnp.float32),   # running row max
                pltpu.VMEM((tm, 1), jnp.float32),   # running denominator sum
                pltpu.VMEM((tm, 1), jnp.float32),   # running weighted numerator
            ]),
        compiler_params=pltpu.CompilerParams(
            dimension_semantics=("parallel", "arbitrary"),
            vmem_limit_bytes=_VMEM_LIMIT),
        cost_estimate=cost,
    )(enc, enc, sq, scores)


def _reference(encodings, scores, tau=1.0):
    """Pure-JAX mirror of the torch scores-path (euclidean, softnn)."""
    B = encodings.shape[0]
    enc = encodings.reshape(B, -1).astype(jnp.float32)
    diff = enc[:, None, :] - enc[None, :, :]
    distances = jnp.sum(diff * diff, axis=-1)
    logits = -distances / tau
    eye = jnp.eye(B, dtype=jnp.float32)
    num = jax.scipy.special.logsumexp(
        logits + jnp.log(scores + 1e-18) - eye * 1e18, axis=-1, keepdims=True)
    den = jax.scipy.special.logsumexp(logits - eye * 1e18, axis=-1, keepdims=True)
    return -1.0 * (num - den)


if __name__ == "__main__":
    key = jax.random.PRNGKey(0)
    k_enc, k_scores = jax.random.split(key)

    B, D = 8, 32
    # encodings: (bsz, 1, hidden), exactly as the torch module receives them
    encodings = jax.random.normal(k_enc, (B, 1, D), dtype=jnp.float32)
    # scores: (bsz, bsz) pairwise weights for the softnn numerator
    scores = jax.random.uniform(k_scores, (B, B), dtype=jnp.float32)

    loss = contrastive_loss_softnn(encodings, scores, tau=1.0)
    loss = jax.block_until_ready(loss)

    ref = _reference(encodings, scores, tau=1.0)
    assert loss.shape == (B, 1)
    assert jnp.allclose(loss, ref, atol=1e-3, rtol=1e-3), (loss, ref)

    print("KERNEL_OK")
</pallas_src>

<mosaic_0001>
module attributes {stable_mosaic.version = 11 : i64} {
  func.func @_softnn_scores_kernel(%arg0: i32, %arg1: i32, %arg2: memref<8x32xf32, #tpu.memory_space<vmem>>, %arg3: memref<8x32xf32, #tpu.memory_space<vmem>>, %arg4: memref<1x8xf32, #tpu.memory_space<vmem>>, %arg5: memref<8x8xf32, #tpu.memory_space<vmem>>, %arg6: memref<8x1xf32, #tpu.memory_space<vmem>>, %arg7: memref<8x1xf32, #tpu.memory_space<vmem>>, %arg8: memref<8x1xf32, #tpu.memory_space<vmem>>, %arg9: memref<8x1xf32, #tpu.memory_space<vmem>>) attributes {dimension_semantics = [#tpu.dimension_semantics<parallel>, #tpu.dimension_semantics<arbitrary>], iteration_bounds = array<i64: 1, 1>, scalar_prefetch = 0 : i64, scratch_operands = 3 : i64, tpu.core_type = #tpu.core_type<tc>, window_params = [{transform_indices = @transform_0, window_bounds = array<i64: 8, 32>}, {transform_indices = @transform_1, window_bounds = array<i64: 8, 32>}, {transform_indices = @transform_2, window_bounds = array<i64: 1, 8>}, {transform_indices = @transform_3, window_bounds = array<i64: 8, 8>}, {transform_indices = @transform_4, window_bounds = array<i64: 8, 1>}]} {
    %c0_i32 = arith.constant 0 : i32
    %0 = arith.cmpi eq, %arg1, %c0_i32 : i32
    %1 = arith.extui %0 : i1 to i32
    %c0_i32_0 = arith.constant 0 : i32
    %2 = arith.cmpi ne, %1, %c0_i32_0 : i32
    scf.if %2 {
      %cst_30 = arith.constant 0xFF800000 : f32
      %53 = vector.broadcast %cst_30 : f32 to vector<8x1xf32>
      %c0_31 = arith.constant 0 : index
      %c0_32 = arith.constant 0 : index
      %54 = vector.load %arg7[%c0_31, %c0_32] : memref<8x1xf32, #tpu.memory_space<vmem>>, vector<8x1xf32>
      tpu.vector_store %arg7[%c0_31, %c0_32], %53 {strides = array<i32>} : memref<8x1xf32, #tpu.memory_space<vmem>>, vector<8x1xf32>,
      %cst_33 = arith.constant 0.000000e+00 : f32
      %55 = vector.broadcast %cst_33 : f32 to vector<8x1xf32>
      %c0_34 = arith.constant 0 : index
      %c0_35 = arith.constant 0 : index
      %56 = vector.load %arg8[%c0_34, %c0_35] : memref<8x1xf32, #tpu.memory_space<vmem>>, vector<8x1xf32>
      tpu.vector_store %arg8[%c0_34, %c0_35], %55 {strides = array<i32>} : memref<8x1xf32, #tpu.memory_space<vmem>>, vector<8x1xf32>,
      %cst_36 = arith.constant 0.000000e+00 : f32
      %57 = vector.broadcast %cst_36 : f32 to vector<8x1xf32>
      %c0_37 = arith.constant 0 : index
      %c0_38 = arith.constant 0 : index
      %58 = vector.load %arg9[%c0_37, %c0_38] : memref<8x1xf32, #tpu.memory_space<vmem>>, vector<8x1xf32>
      tpu.vector_store %arg9[%c0_37, %c0_38], %57 {strides = array<i32>} : memref<8x1xf32, #tpu.memory_space<vmem>>, vector<8x1xf32>,
    } else {
    }
    %c0 = arith.constant 0 : index
    %c0_1 = arith.constant 0 : index
    %3 = vector.load %arg2[%c0, %c0_1] : memref<8x32xf32, #tpu.memory_space<vmem>>, vector<8x32xf32>
    %c0_2 = arith.constant 0 : index
    %c0_3 = arith.constant 0 : index
    %4 = vector.load %arg3[%c0_2, %c0_3] : memref<8x32xf32, #tpu.memory_space<vmem>>, vector<8x32xf32>
    %cst = arith.constant dense<0.000000e+00> : vector<8x8xf32>
    %5 = tpu.matmul %3, %4, %cst {dimension_numbers = #tpu.dot_dimension_numbers<[1], [1], [0], [0], [0, 0, 1, 0], [], []>} : vector<8x32xf32>, vector<8x32xf32>, vector<8x8xf32> -> vector<8x8xf32>
    %cst_4 = arith.constant 2.000000e+00 : f32
    %6 = vector.broadcast %cst_4 : f32 to vector<8x8xf32>
    %7 = arith.mulf %6, %5 : vector<8x8xf32>
    %c0_5 = arith.constant 0 : index
    %c0_6 = arith.constant 0 : index
    %8 = vector.load %arg4[%c0_5, %c0_6] : memref<1x8xf32, #tpu.memory_space<vmem>>, vector<1x8xf32>
    %9 = vector.broadcast %8 : vector<1x8xf32> to vector<8x8xf32>
    %10 = arith.subf %7, %9 : vector<8x8xf32>
    %cst_7 = arith.constant 1.000000e+00 : f32
    %11 = vector.broadcast %cst_7 : f32 to vector<8x8xf32>
    %12 = arith.mulf %10, %11 : vector<8x8xf32>
    %c8_i32 = arith.constant 8 : i32
    %13 = arith.muli %arg0, %c8_i32 : i32
    %14 = tpu.iota {dimensions = array<i32: 0>} : vector<8x8xi32>
    %15 = vector.broadcast %13 : i32 to vector<8x8xi32>
    %16 = arith.addi %15, %14 : vector<8x8xi32>
    %c8_i32_8 = arith.constant 8 : i32
    %17 = arith.muli %arg1, %c8_i32_8 : i32
    %18 = tpu.iota {dimensions = array<i32: 1>} : vector<8x8xi32>
    %19 = vector.broadcast %17 : i32 to vector<8x8xi32>
    %20 = arith.addi %19, %18 : vector<8x8xi32>
    %21 = arith.cmpi eq, %16, %20 : vector<8x8xi32>
    %cst_9 = arith.constant -1.000000e+30 : f32
    %22 = vector.broadcast %cst_9 : f32 to vector<8x8xf32>
    %23 = arith.select %21, %22, %12 : vector<8x8xi1>, vector<8x8xf32>
    %c0_10 = arith.constant 0 : index
    %c0_11 = arith.constant 0 : index
    %24 = vector.load %arg7[%c0_10, %c0_11] : memref<8x1xf32, #tpu.memory_space<vmem>>, vector<8x1xf32>
    %cst_12 = arith.constant dense<0xFF800000> : vector<8xf32>
    %25 = vector.multi_reduction <maximumf>, %23, %cst_12 [1] : vector<8x8xf32> to vector<8xf32>
    %26 = vector.shape_cast %25 : vector<8xf32> to vector<8x1xf32>
    %27 = arith.maximumf %24, %26 : vector<8x1xf32>
    %28 = arith.subf %24, %27 : vector<8x1xf32>
    %29 = math.exp %28 : vector<8x1xf32>
    %30 = vector.broadcast %27 : vector<8x1xf32> to vector<8x8xf32>
    %31 = arith.subf %23, %30 : vector<8x8xf32>
    %32 = math.exp %31 : vector<8x8xf32>
    %c0_13 = arith.constant 0 : index
    %c0_14 = arith.constant 0 : index
    %33 = vector.load %arg5[%c0_13, %c0_14] : memref<8x8xf32, #tpu.memory_space<vmem>>, vector<8x8xf32>
    %c0_15 = arith.constant 0 : index
    %c0_16 = arith.constant 0 : index
    %34 = vector.load %arg8[%c0_15, %c0_16] : memref<8x1xf32, #tpu.memory_space<vmem>>, vector<8x1xf32>
    %35 = arith.mulf %29, %34 : vector<8x1xf32>
    %cst_17 = arith.constant dense<0.000000e+00> : vector<8xf32>
    %36 = vector.multi_reduction <add>, %32, %cst_17 [1] : vector<8x8xf32> to vector<8xf32>
    %37 = vector.shape_cast %36 : vector<8xf32> to vector<8x1xf32>
    %38 = arith.addf %35, %37 : vector<8x1xf32>
    %c0_18 = arith.constant 0 : index
    %c0_19 = arith.constant 0 : index
    %39 = vector.load %arg8[%c0_18, %c0_19] : memref<8x1xf32, #tpu.memory_space<vmem>>, vector<8x1xf32>
    tpu.vector_store %arg8[%c0_18, %c0_19], %38 {strides = array<i32>} : memref<8x1xf32, #tpu.memory_space<vmem>>, vector<8x1xf32>,
    %c0_20 = arith.constant 0 : index
    %c0_21 = arith.constant 0 : index
    %40 = vector.load %arg9[%c0_20, %c0_21] : memref<8x1xf32, #tpu.memory_space<vmem>>, vector<8x1xf32>
    %41 = arith.mulf %29, %40 : vector<8x1xf32>
    %cst_22 = arith.constant 1.000000e-18 : f32
    %42 = vector.broadcast %cst_22 : f32 to vector<8x8xf32>
    %43 = arith.addf %33, %42 : vector<8x8xf32>
    %44 = arith.mulf %32, %43 : vector<8x8xf32>
    %cst_23 = arith.constant dense<0.000000e+00> : vector<8xf32>
    %45 = vector.multi_reduction <add>, %44, %cst_23 [1] : vector<8x8xf32> to vector<8xf32>
    %46 = vector.shape_cast %45 : vector<8xf32> to vector<8x1xf32>
    %47 = arith.addf %41, %46 : vector<8x1xf32>
    %c0_24 = arith.constant 0 : index
    %c0_25 = arith.constant 0 : index
    %48 = vector.load %arg9[%c0_24, %c0_25] : memref<8x1xf32, #tpu.memory_space<vmem>>, vector<8x1xf32>
    tpu.vector_store %arg9[%c0_24, %c0_25], %47 {strides = array<i32>} : memref<8x1xf32, #tpu.memory_space<vmem>>, vector<8x1xf32>,
    %c0_26 = arith.constant 0 : index
    %c0_27 = arith.constant 0 : index
    %49 = vector.load %arg7[%c0_26, %c0_27] : memref<8x1xf32, #tpu.memory_space<vmem>>, vector<8x1xf32>
    tpu.vector_store %arg7[%c0_26, %c0_27], %27 {strides = array<i32>} : memref<8x1xf32, #tpu.memory_space<vmem>>, vector<8x1xf32>,
    %c0_i32_28 = arith.constant 0 : i32
    %50 = arith.cmpi eq, %arg1, %c0_i32_28 : i32
    %51 = arith.extui %50 : i1 to i32
    %c0_i32_29 = arith.constant 0 : i32
    %52 = arith.cmpi ne, %51, %c0_i32_29 : i32
    scf.if %52 {
      %c0_30 = arith.constant 0 : index
      %c0_31 = arith.constant 0 : index
      %53 = vector.load %arg8[%c0_30, %c0_31] : memref<8x1xf32, #tpu.memory_space<vmem>>, vector<8x1xf32>
      %54 = math.log %53 : vector<8x1xf32>
      %c0_32 = arith.constant 0 : index
      %c0_33 = arith.constant 0 : index
      %55 = vector.load %arg9[%c0_32, %c0_33] : memref<8x1xf32, #tpu.memory_space<vmem>>, vector<8x1xf32>
      %56 = math.log %55 : vector<8x1xf32>
      %57 = arith.subf %54, %56 : vector<8x1xf32>
      %c0_34 = arith.constant 0 : index
      %c0_35 = arith.constant 0 : index
      %58 = vector.load %arg6[%c0_34, %c0_35] : memref<8x1xf32, #tpu.memory_space<vmem>>, vector<8x1xf32>
      tpu.vector_store %arg6[%c0_34, %c0_35], %57 {strides = array<i32>} : memref<8x1xf32, #tpu.memory_space<vmem>>, vector<8x1xf32>,
    } else {
    }
    return
  }
  func.func @transform_0(%arg0: i32, %arg1: i32) -> (i32, i32) {
    %c0_i32 = arith.constant 0 : i32
    %c0_i32_0 = arith.constant 0 : i32
    return %arg0, %c0_i32 : i32, i32
  }
  func.func @transform_1(%arg0: i32, %arg1: i32) -> (i32, i32) {
    %c0_i32 = arith.constant 0 : i32
    %c0_i32_0 = arith.constant 0 : i32
    return %arg1, %c0_i32 : i32, i32
  }
  func.func @transform_2(%arg0: i32, %arg1: i32) -> (i32, i32) {
    %c0_i32 = arith.constant 0 : i32
    %c0_i32_0 = arith.constant 0 : i32
    return %c0_i32, %arg1 : i32, i32
  }
  func.func @transform_3(%arg0: i32, %arg1: i32) -> (i32, i32) {
    %c0_i32 = arith.constant 0 : i32
    return %arg0, %arg1 : i32, i32
  }
  func.func @transform_4(%arg0: i32, %arg1: i32) -> (i32, i32) {
    %c0_i32 = arith.constant 0 : i32
    %c0_i32_0 = arith.constant 0 : i32
    return %arg0, %c0_i32 : i32, i32
  }
}

</mosaic_0001>

<bundles_post_ra>
// kernel: tpu_custom_call.1
= control target key start
LH: loop header
LB: loop body
LE: loop exit
PB: predicated region body
PF: predicated region fallthrough
CT: control target
= control target key end

     0   :  { %9 = vsyncpa [#allocation6], 0  ;;  %s349_s0 = inlined_call_operand.hbm [shape: f32[8,32], index: 0, kind: input, shape index: {}]   ;;  %s350_s1 = inlined_call_operand.hbm [shape: f32[8,32], index: 1, kind: input, shape index: {}]   ;;  %s351_s2 = inlined_call_operand.vmem [shape: f32[1,8], index: 2, kind: input, shape index: {}]   ;;  %s352_s3 = inlined_call_operand.vmem [shape: f32[8,8], index: 3, kind: input, shape index: {}]   ;;  %s353_s4 = inlined_call_operand.vmem [shape: f32[8,1], index: 4, kind: output, shape index: {}]  }
   0x1   :  { %10 = vsyncpa [#allocation8], 0  ;;  %s275_s15 = smov [#allocation5]   ;;  %s276_s17 = smov [#allocation7]  }
   0x2   :  { %s17_s16 = sshll.u32 %s275_s15, 4  ;;  %s27_s18 = sshll.u32 %s276_s17, 4  ;;  %s18_s16 = int_to_ptr.vmem [resolvable:$true] %s17_s16  ;;  %s28_s18 = int_to_ptr.vmem [resolvable:$true] %s27_s18 }
   0x3   :  { %s227_s21 = scalar_lea.hbm %s349_s0, 128 }
   0x4   :  { %p228_p0 = scmp.ne.s32.totalorder %s349_s0, %s227_s21  ;;  %p231_p1 = scmp.lt.u32.totalorder %s227_s21, %s349_s0 }
   0x6   :  { %p233_p2 = pnand %p231_p1, %p228_p0 }
   0x8   :  { %236 = shalt.err (!%p233_p2)
}
   0x9   :  { %s237_s26 = scalar_lea.vmem %s18_s16, 128  ;;  %p242_p4 = scmp.lt.s32.totalorder %s18_s16, %s18_s16 }
   0xa   :  { %p238_p3 = scmp.ne.s32.totalorder %s18_s16, %s237_s26  ;;  %p243_p5 = scmp.lt.s32.totalorder %s237_s26, %s237_s26 }
   0xc   :  { %p244_p6 = por %p243_p5, %p242_p4 }
   0xe   :  { %p245_p7 = pnand %p244_p6, %p238_p3 }
  0x10   :  { %248 = shalt.err (!%p245_p7)
}
  0x11   :  { %20 = dma.hbm_to_vmem [thread:$0]  %s349_s0, 128, %s18_s16, [#allocation6]  }
  0x12   :  { %s249_s5 = scalar_lea.hbm %s350_s1, 128 }
  0x13   :  { %p250_p8 = scmp.ne.s32.totalorder %s350_s1, %s249_s5  ;;  %p253_p9 = scmp.lt.u32.totalorder %s249_s5, %s350_s1 }
  0x15   :  { %p255_p10 = pnand %p253_p9, %p250_p8 }
  0x17   :  { %258 = shalt.err (!%p255_p10)
}
  0x18   :  { %s259_s10 = scalar_lea.vmem %s28_s18, 128  ;;  %p264_p12 = scmp.lt.s32.totalorder %s28_s18, %s28_s18 }
  0x19   :  { %p260_p11 = scmp.ne.s32.totalorder %s28_s18, %s259_s10  ;;  %p265_p13 = scmp.lt.s32.totalorder %s259_s10, %s259_s10 }
  0x1b   :  { %p266_p0 = por %p265_p13, %p264_p12 }
  0x1d   :  { %p267_p1 = pnand %p266_p0, %p260_p11 }
  0x1f   :  { %270 = shalt.err (!%p267_p1)
}
  0x20   :  { %30 = dma.hbm_to_vmem [thread:$0]  %s350_s1, 128, %s28_s18, [#allocation8]  }
  0x21   :  { %271 = dma.done.wait [#allocation6], 128  }
  0x22   :  { %272 = vsyncadd [#allocation6], 4294967168 }
  0x23   :  { %273 = dma.done.wait [#allocation8], 128  }
  0x24   :  { %274 = vsyncadd [#allocation8], 4294967168  ;;  %vm45_vm0 = vcmask 7168   ;;  %v277_v0 = vmov 0.0   ;;  %vm278_vm1 = vmmov 0   ;;  %vm51_vm2 = vcmask 261120  }
  0x25   :  { %47 = vst.msk [vmem:[#allocation3] sm:$0xff] %vm45_vm0, %v277_v0  ;;  %48 = vst.msk [vmem:[#allocation4] sm:$0xff] %vm45_vm0, %v277_v0  ;;  %207 = vmatprep.subr.mxu0 %v277_v0  ;;  %209 = vmatprep.mubr.msk.f32.mxu0 %vm278_vm1, %v277_v0  ;;  %v50_v1 = vld [vmem:[#allocation7] sm:$0xff]  ;;  %v49_v2 = vld [vmem:[#allocation5] sm:$0xff]  ;;  %v279_v3 = vmov -inf   ;;  %v138_v4 = vlaneseq  ;;  %vm150_vm4 = vcmask 64512  }
  0x26   :  { %208 = vmatpush3.xpose.msk.msra.mxu0 %vm51_vm2, %v50_v1  ;;  %46 = vst.msk [vmem:[#allocation2] sm:$0xff] %vm45_vm0, %v279_v3  ;;  %v204_v8 = vld [vmem:[%s351_s2] ss:$0 sm:$0xff]  ;;  %v280_v14 = vmov 0  }
  0x27   :  { %v139_v5 = vshrl.u32 %v138_v4, 7  ;;  %v144_v6 = vand.u32 127, %v138_v4  ;;  %218 = vset.pattern.permute.xlu0 %v280_v14  ;;  %v166_v22 = vld [vmem:[%s352_s3] sm:$0xff] }
  0x28   :  { %v177_v23 = vadd.f32 1e-18, %v166_v22 }
  0x29   :  { %210 = vmatmul.mubr.msk.f32.vlgmr.msra.gmra.mrb[0].mxu0 %vm51_vm2, %v49_v2  ;;  %vm147_vm3 = vcmp.eq.s32.totalorder %v139_v5, %v144_v6 }
  0x2c   :  { %v167_v30 = vld [vmem:[#allocation3] sm:$0xff]  ;;  %v175_v33 = vld [vmem:[#allocation4] sm:$0xff] }
  0x2d   :  { %v149_v15 = vld [vmem:[#allocation2] sm:$0xff] }
  0xfc   :  { %v124_v7 = vpop.f32.mrb[0].mxu0 }
  0xfd   :  { %v128_v9 = vmul.f32 2.0, %v124_v7  ;;  %v211_v10 = vpop.f32.mrb[1].mxu0 }
  0xff   :  { %v136_v11 = vsub.f32 %v128_v9, %v204_v8 }
 0x101   :  { %v148_v12 = vsel %vm147_vm3, -1e+30, %v136_v11 }
 0x102   :  { %v151_v13 = vsel %vm150_vm4, %v148_v12, -inf }
 0x103   :  { %152 = vmax.xlane.f32.xlu0 %v151_v13 }
 0x190   :  { %v153_v16 = vpop.xlane.xlu0 %152 }
 0x191   :  { %v154_v17 = vmax.f32 %v149_v15, %v153_v16 }
 0x193   :  { %v155_v18 = vsub.f32 %v149_v15, %v154_v17  ;;  %184 = vst.msk [vmem:[#allocation2] sm:$0xff] %vm45_vm0, %v154_v17  ;;  %160 = vperm.xlu0 %218, %v154_v17  }
 0x195   :  { %v156_v28 = vmul.f32 1.442695, %v155_v18 }
 0x212   :  { %v161_v19 = vpop.permute.xlu0 %160 }
 0x213   :  { %v163_v20 = vsub.f32 %v148_v12, %v161_v19 }
 0x215   :  { %v164_v21 = vmul.f32 1.442695, %v163_v20 }
 0x217   :  { %219 = vpow2.f32 %v164_v21 }
 0x218   :  { %221 = vpow2.f32 %v156_v28 }
 0x221   :  { %v220_v24 = vpop.eup %219 }
 0x222   :  { %v169_v25 = vsel %vm150_vm4, %v220_v24, 0.0  ;;  %v178_v26 = vmul.f32 %v220_v24, %v177_v23  ;;  %v222_v29 = vpop.eup %221 }
 0x223   :  { %170 = vadd.xlane.f32.xlu1 %v169_v25  ;;  %v168_v31 = vmul.f32 %v222_v29, %v167_v30  ;;  %v176_v35 = vmul.f32 %v222_v29, %v175_v33 }
 0x224   :  { %v179_v27 = vsel %vm150_vm4, %v178_v26, 0.0 }
 0x227   :  { %180 = vadd.xlane.f32.xlu1 %v179_v27 }
 0x2b0   :  { %v171_v32 = vpop.xlane.xlu1 %170 }
 0x2b1   :  { %v172_v34 = vadd.f32 %v171_v32, %v168_v31 }
 0x2b3   :  { %174 = vst.msk [vmem:[#allocation3] sm:$0xff] %vm45_vm0, %v172_v34 }
 0x2b4   :  { %v181_v36 = vpop.xlane.xlu1 %180 }
 0x2b5   :  { %v182_v37 = vadd.f32 %v181_v36, %v176_v35 }
 0x2b7   :  { %183 = vst.msk [vmem:[#allocation4] sm:$0xff] %vm45_vm0, %v182_v37 }
 0x2ba   :  { %v188_v38 = vld [vmem:[#allocation3] sm:$0xff] }
 0x2bb   :  { %223 = vlog2.f32 %v188_v38 }
 0x2be   :  { %v191_v39 = vld [vmem:[#allocation4] sm:$0xff] }
 0x2bf   :  { %225 = vlog2.f32 %v191_v39 }
 0x2c5   :  { %v224_v40 = vpop.eup %223 }
 0x2c6   :  { %v190_v42 = vmul.f32 0.6931472, %v224_v40 }
 0x2c9   :  { %v226_v41 = vpop.eup %225 }
 0x2ca   :  { %v193_v43 = vmul.f32 0.6931472, %v226_v41 }
 0x2cc   :  { %v194_v44 = vsub.f32 %v190_v42, %v193_v43 }
 0x2ce   :  { %195 = vst.msk [vmem:[%s353_s4] sm:$0xff] %vm45_vm0, %v194_v44 }
 0x2cf   :  { %200 = vsyncpa [#allocation6], 1 }
 0x2d0   :  { %201 = vsyncpa [#allocation8], 1 }

</bundles_post_ra>
